<compile_context>
chip_gen: v7x
topology: tpu7x:2x2x1
jax: 0.10.0
libtpu: 0.0.40
codegen_flags: <defaults>
</compile_context>

<pallas_src>
import functools

import jax
import jax.numpy as jnp
from jax.experimental import pallas as pl
from jax.experimental.pallas import tpu as pltpu


_LANE = 128
_SUBLANE = 8


def _round_up(n, m):
    return ((n + m - 1) // m) * m


def _cdiv(a, b):
    return (a + b - 1) // b


# ----------------------------------------------------------------------------
# Kernel
# ----------------------------------------------------------------------------
def _make_prednet_kernel(num_linear):
    """Kernel for an MLP with `num_linear` time-conditioned Linear layers."""

    def kernel(*refs):
        # refs = (x, t, [wx_0, wt_0, ..., wx_{L-1}, wt_{L-1}], out)
        x_ref = refs[0]
        t_ref = refs[1]
        param_refs = refs[2:2 + 2 * num_linear]
        o_ref = refs[2 + 2 * num_linear]

        # Time-feature powers, computed ONCE (hoisted out of the layer loop).
        tt = t_ref[...].astype(jnp.float32)   # (TB, 1)
        t1 = tt                                # t
        t2 = tt * tt                           # t^2
        t3 = (tt - 1.0 / 3.0) ** 2             # (t - 1/3)^2
        t4 = (tt - 2.0 / 3.0) ** 2             # (t - 2/3)^2

        h = x_ref[...]                         # (TB, D_in), f32 or bf16
        for i in range(num_linear):
            wx_ref = param_refs[2 * i]         # (D_i, D_{i+1}) bf16
            wt = param_refs[2 * i + 1][...]    # (5,   D_{i+1}) f32, bias in row 0

            # MXU matmul: bf16 inputs, f32 accumulation.
            y = jnp.dot(h.astype(jnp.bfloat16), wx_ref[...],
                        preferred_element_type=jnp.float32)

            # Time features as broadcast FMAs on the VPU (bias folded in wt[0]).
            y = y + wt[0:1, :]
            y = y + t1 * wt[1:2, :]
            y = y + t2 * wt[2:3, :]
            y = y + t3 * wt[3:4, :]
            y = y + t4 * wt[4:5, :]

            if i < num_linear - 1:
                y = jnp.maximum(y, 0.0)        # ReLU; Dropout = identity (eval)
            h = y

        o_ref[...] = h.astype(o_ref.dtype)     # narrow (TB, out_dim) store

    return kernel


# ----------------------------------------------------------------------------
# One-time parameter prep
# ----------------------------------------------------------------------------
def prepare_prednet_params(params):
    """Split each PyTorch weight [out, in+5] into Wx:(in,out) bf16 and
    Wt:(5,out) f32 with the bias folded into the t^0 row.  No lane padding.

    Returns (prepared, out_dim) where prepared = ((wx, wt), ...).
    """
    prepared = []
    for (w, b) in params:
        w = jnp.asarray(w, jnp.float32)
        b = jnp.asarray(b, jnp.float32)
        d_in = w.shape[1] - 5
        wx = w[:, :d_in].T                     # (d_in, out)
        wt = w[:, d_in:].T                     # (5,    out)
        wt = wt.at[0, :].add(b)                # fold bias into t^0 row
        prepared.append((wx.astype(jnp.bfloat16), wt.astype(jnp.float32)))
    out_dim = int(prepared[-1][0].shape[1])
    return tuple(prepared), out_dim


# ----------------------------------------------------------------------------
# Tile / VMEM planning (per chip generation)
# ----------------------------------------------------------------------------
def _vmem_capacity_bytes():
    try:
        return int(pltpu.get_tpu_info().vmem_capacity_bytes)
    except Exception:
        return 64 * 1024 * 1024                # conservative: v7x per-TC VMEM


def _plan_tiles(B, d_in, layer_widths, out_dim, tile_b, x_itemsize):
    vmem = _vmem_capacity_bytes()
    # <=48 MiB on a 64 MiB part (v7x), up to 96 MiB on 128 MiB parts (v5e/v6e).
    vmem_limit = int(min((vmem * 3) // 4, 96 * 1024 * 1024))

    # Double-buffered streamed tiles are lane-padded to 128 in VMEM.
    per_row = 2 * _round_up(d_in, _LANE) * x_itemsize       # x stream
    per_row += 2 * _LANE * 4                                 # t stream
    per_row += 2 * _round_up(out_dim, _LANE) * 4             # out stream
    widest = max(layer_widths)                               # live intermediates
    per_row += 3 * _round_up(widest, _LANE) * 4              # headroom

    cap = (vmem_limit // 2) // per_row
    cap = max(_SUBLANE, (cap // _SUBLANE) * _SUBLANE)
    if tile_b is not None:
        cap = min(cap, max(_SUBLANE, _round_up(int(tile_b), _SUBLANE)))

    b8 = _round_up(B, _SUBLANE)
    n = max(1, _cdiv(b8, cap))
    if n == 1 and b8 >= 2 * _SUBLANE:
        n = 2                     # >=2 tiles so megacore (v7x) shards the batch
    tb = _round_up(_cdiv(b8, n), _SUBLANE)
    b_pad = n * tb                # padding waste < 8 * n rows
    return tb, b_pad, vmem_limit


# ----------------------------------------------------------------------------
# Forward
# ----------------------------------------------------------------------------
@functools.partial(jax.jit, static_argnames=("out_dim", "tb", "b_pad", "vmem_limit"))
def _prednet_call(x, t, flat_params, *, out_dim, tb, b_pad, vmem_limit):
    B, d_in = x.shape
    t = jnp.reshape(t, (B, 1)).astype(jnp.float32)
    if b_pad != B:
        x = jnp.pad(x, ((0, b_pad - B), (0, 0)))
        t = jnp.pad(t, ((0, b_pad - B), (0, 0)))

    num_linear = len(flat_params) // 2

    in_specs = [
        pl.BlockSpec((tb, d_in), lambda i: (i, 0)),   # x: tiled over batch
        pl.BlockSpec((tb, 1), lambda i: (i, 0)),      # t: tiled over batch
    ]
    for p in flat_params:                              # weights: VMEM-resident
        in_specs.append(pl.BlockSpec(p.shape, lambda i: (0, 0)))

    # Advisory cost estimate for XLA scheduling.
    flops = 0
    bytes_accessed = (x.size * x.dtype.itemsize + t.size * 4
                      + b_pad * out_dim * 4)
    for li in range(num_linear):
        wx = flat_params[2 * li]
        wt = flat_params[2 * li + 1]
        flops += 2 * b_pad * wx.shape[0] * wx.shape[1] + 10 * b_pad * wx.shape[1]
        bytes_accessed += wx.size * wx.dtype.itemsize + wt.size * 4

    out = pl.pallas_call(
        _make_prednet_kernel(num_linear),
        out_shape=jax.ShapeDtypeStruct((b_pad, out_dim), jnp.float32),
        grid_spec=pltpu.PrefetchScalarGridSpec(
            num_scalar_prefetch=0,
            grid=(b_pad // tb,),
            in_specs=in_specs,
            out_specs=pl.BlockSpec((tb, out_dim), lambda i: (i, 0)),
        ),
        compiler_params=pltpu.CompilerParams(
            dimension_semantics=("parallel",),        # megacore sharding on v7x
            vmem_limit_bytes=vmem_limit,
        ),
        cost_estimate=pl.CostEstimate(
            flops=flops, transcendentals=0, bytes_accessed=bytes_accessed),
    )(x, t, *flat_params)

    if b_pad != B:
        out = out[:B]
    return out


def prednet_forward(x, t, prepared, out_dim, tile_b=None):
    """PredNet forward: x (B, D_in) f32/bf16, t (B,) or (B,1) -> (B, out_dim)."""
    B, d_in = x.shape
    layer_widths = tuple(int(wx.shape[1]) for wx, _ in prepared)
    tb, b_pad, vmem_limit = _plan_tiles(
        B, d_in, layer_widths, out_dim, tile_b, jnp.dtype(x.dtype).itemsize)
    flat = []
    for wx, wt in prepared:
        flat += [wx, wt]
    return _prednet_call(x, t, tuple(flat), out_dim=out_dim, tb=tb,
                         b_pad=b_pad, vmem_limit=vmem_limit)


# ----------------------------------------------------------------------------
# Init + pure-JAX reference (test harness)
# ----------------------------------------------------------------------------
def init_prednet_params(key, input_dim, hidden_dims, output_dim=1):
    """Deterministic PyTorch-style Linear init: U(-1/sqrt(fan_in), 1/sqrt(fan_in))."""
    dims = [input_dim] + list(hidden_dims)
    params = []
    for i in range(len(dims) - 1):
        fan_in = dims[i] + 5
        k = 1.0 / jnp.sqrt(fan_in)
        key, kw, kb = jax.random.split(key, 3)
        w = jax.random.uniform(kw, (dims[i + 1], fan_in), jnp.float32, -k, k)
        b = jax.random.uniform(kb, (dims[i + 1],), jnp.float32, -k, k)
        params.append((w, b))
    fan_in = dims[-1] + 5
    k = 1.0 / jnp.sqrt(fan_in)
    key, kw, kb = jax.random.split(key, 3)
    w = jax.random.uniform(kw, (output_dim, fan_in), jnp.float32, -k, k)
    b = jax.random.uniform(kb, (output_dim,), jnp.float32, -k, k)
    params.append((w, b))
    return params


def _reference_forward(x, t, params):
    """Pure-JAX f32 reference mirroring the PyTorch forward (eval mode)."""
    t = t.reshape(-1, 1)
    t_feat = jnp.concatenate(
        [jnp.ones_like(t), t, t * t, (t - 1.0 / 3.0) ** 2, (t - 2.0 / 3.0) ** 2],
        axis=1,
    )
    h = x
    for i, (w, b) in enumerate(params):
        h = jnp.concatenate([h, t_feat], axis=1) @ w.T + b
        if i < len(params) - 1:
            h = jnp.maximum(h, 0.0)
    return h


if __name__ == "__main__":
    key = jax.random.PRNGKey(0)
    k_param, k_x, k_t = jax.random.split(key, 3)

    batch = 12            # exercises the ragged-batch padding + 2-tile grid path
    input_dim = 16
    hidden_dims = [32, 32]
    output_dim = 1

    params = init_prednet_params(k_param, input_dim, hidden_dims, output_dim)
    prepared, out_dim = prepare_prednet_params(params)   # one-time prep

    x = jax.random.normal(k_x, (batch, input_dim), jnp.float32)
    t = jax.random.uniform(k_t, (batch,), jnp.float32)

    out = prednet_forward(x, t, prepared, out_dim)
    out = jax.block_until_ready(out)

    ref = _reference_forward(x, t, params)
    assert out.shape == (batch, output_dim), out.shape
    # bf16 matmul inputs with f32 accumulation -> slightly looser tolerance.
    assert jnp.allclose(out, ref, atol=5e-2, rtol=5e-2), (
        float(jnp.max(jnp.abs(out - ref))))

    print("KERNEL_OK")
</pallas_src>

<mosaic_0001>
module attributes {stable_mosaic.version = 11 : i64} {
  func.func @kernel(%arg0: i32, %arg1: memref<8x16xf32, #tpu.memory_space<vmem>>, %arg2: memref<8x1xf32, #tpu.memory_space<vmem>>, %arg3: memref<16x32xbf16, #tpu.memory_space<vmem>>, %arg4: memref<5x32xf32, #tpu.memory_space<vmem>>, %arg5: memref<32x32xbf16, #tpu.memory_space<vmem>>, %arg6: memref<5x32xf32, #tpu.memory_space<vmem>>, %arg7: memref<32x1xbf16, #tpu.memory_space<vmem>>, %arg8: memref<5x1xf32, #tpu.memory_space<vmem>>, %arg9: memref<8x1xf32, #tpu.memory_space<vmem>>) attributes {dimension_semantics = [#tpu.dimension_semantics<parallel>], iteration_bounds = array<i64: 2>, scalar_prefetch = 0 : i64, scratch_operands = 0 : i64, tpu.core_type = #tpu.core_type<tc>, window_params = [{transform_indices = @transform_0, window_bounds = array<i64: 8, 16>}, {transform_indices = @transform_1, window_bounds = array<i64: 8, 1>}, {pipeline_mode = #tpu.pipeline_mode<synchronous>, transform_indices = @transform_2, window_bounds = array<i64: 16, 32>}, {pipeline_mode = #tpu.pipeline_mode<synchronous>, transform_indices = @transform_3, window_bounds = array<i64: 5, 32>}, {pipeline_mode = #tpu.pipeline_mode<synchronous>, transform_indices = @transform_4, window_bounds = array<i64: 32, 32>}, {pipeline_mode = #tpu.pipeline_mode<synchronous>, transform_indices = @transform_5, window_bounds = array<i64: 5, 32>}, {pipeline_mode = #tpu.pipeline_mode<synchronous>, transform_indices = @transform_6, window_bounds = array<i64: 32, 1>}, {pipeline_mode = #tpu.pipeline_mode<synchronous>, transform_indices = @transform_7, window_bounds = array<i64: 5, 1>}, {transform_indices = @transform_8, window_bounds = array<i64: 8, 1>}]} {
    %c0 = arith.constant 0 : index
    %c0_0 = arith.constant 0 : index
    %0 = vector.load %arg2[%c0, %c0_0] : memref<8x1xf32, #tpu.memory_space<vmem>>, vector<8x1xf32>
    %1 = arith.mulf %0, %0 : vector<8x1xf32>
    %cst = arith.constant 0.333333343 : f32
    %2 = vector.broadcast %cst : f32 to vector<8x1xf32>
    %3 = arith.subf %0, %2 : vector<8x1xf32>
    %4 = arith.mulf %3, %3 : vector<8x1xf32>
    %cst_1 = arith.constant 0.666666686 : f32
    %5 = vector.broadcast %cst_1 : f32 to vector<8x1xf32>
    %6 = arith.subf %0, %5 : vector<8x1xf32>
    %7 = arith.mulf %6, %6 : vector<8x1xf32>
    %c0_2 = arith.constant 0 : index
    %c0_3 = arith.constant 0 : index
    %8 = vector.load %arg1[%c0_2, %c0_3] : memref<8x16xf32, #tpu.memory_space<vmem>>, vector<8x16xf32>
    %c0_4 = arith.constant 0 : index
    %c0_5 = arith.constant 0 : index
    %9 = vector.load %arg4[%c0_4, %c0_5] : memref<5x32xf32, #tpu.memory_space<vmem>>, vector<5x32xf32>
    %10 = arith.truncf %8 : vector<8x16xf32> to vector<8x16xbf16>
    %c0_6 = arith.constant 0 : index
    %c0_7 = arith.constant 0 : index
    %11 = vector.load %arg3[%c0_6, %c0_7] : memref<16x32xbf16, #tpu.memory_space<vmem>>, vector<16x32xbf16>
    %cst_8 = arith.constant dense<0.000000e+00> : vector<8x32xf32>
    %12 = tpu.matmul %10, %11, %cst_8 {dimension_numbers = #tpu.dot_dimension_numbers<[1], [0], [0], [1], [0, 0, 1, 1], [], []>} : vector<8x16xbf16>, vector<16x32xbf16>, vector<8x32xf32> -> vector<8x32xf32>
    %13 = vector.extract_strided_slice %9 {offsets = [0, 0], sizes = [1, 32], strides = [1, 1]} : vector<5x32xf32> to vector<1x32xf32>
    %14 = vector.broadcast %13 : vector<1x32xf32> to vector<8x32xf32>
    %15 = arith.addf %12, %14 : vector<8x32xf32>
    %16 = vector.extract_strided_slice %9 {offsets = [1, 0], sizes = [1, 32], strides = [1, 1]} : vector<5x32xf32> to vector<1x32xf32>
    %17 = vector.broadcast %0 : vector<8x1xf32> to vector<8x32xf32>
    %18 = vector.broadcast %16 : vector<1x32xf32> to vector<8x32xf32>
    %19 = arith.mulf %17, %18 : vector<8x32xf32>
    %20 = arith.addf %15, %19 : vector<8x32xf32>
    %21 = vector.extract_strided_slice %9 {offsets = [2, 0], sizes = [1, 32], strides = [1, 1]} : vector<5x32xf32> to vector<1x32xf32>
    %22 = vector.broadcast %1 : vector<8x1xf32> to vector<8x32xf32>
    %23 = vector.broadcast %21 : vector<1x32xf32> to vector<8x32xf32>
    %24 = arith.mulf %22, %23 : vector<8x32xf32>
    %25 = arith.addf %20, %24 : vector<8x32xf32>
    %26 = vector.extract_strided_slice %9 {offsets = [3, 0], sizes = [1, 32], strides = [1, 1]} : vector<5x32xf32> to vector<1x32xf32>
    %27 = vector.broadcast %4 : vector<8x1xf32> to vector<8x32xf32>
    %28 = vector.broadcast %26 : vector<1x32xf32> to vector<8x32xf32>
    %29 = arith.mulf %27, %28 : vector<8x32xf32>
    %30 = arith.addf %25, %29 : vector<8x32xf32>
    %31 = vector.extract_strided_slice %9 {offsets = [4, 0], sizes = [1, 32], strides = [1, 1]} : vector<5x32xf32> to vector<1x32xf32>
    %32 = vector.broadcast %7 : vector<8x1xf32> to vector<8x32xf32>
    %33 = vector.broadcast %31 : vector<1x32xf32> to vector<8x32xf32>
    %34 = arith.mulf %32, %33 : vector<8x32xf32>
    %35 = arith.addf %30, %34 : vector<8x32xf32>
    %cst_9 = arith.constant 0.000000e+00 : f32
    %36 = vector.broadcast %cst_9 : f32 to vector<8x32xf32>
    %37 = arith.maximumf %35, %36 : vector<8x32xf32>
    %c0_10 = arith.constant 0 : index
    %c0_11 = arith.constant 0 : index
    %38 = vector.load %arg6[%c0_10, %c0_11] : memref<5x32xf32, #tpu.memory_space<vmem>>, vector<5x32xf32>
    %39 = arith.truncf %37 : vector<8x32xf32> to vector<8x32xbf16>
    %c0_12 = arith.constant 0 : index
    %c0_13 = arith.constant 0 : index
    %40 = vector.load %arg5[%c0_12, %c0_13] : memref<32x32xbf16, #tpu.memory_space<vmem>>, vector<32x32xbf16>
    %cst_14 = arith.constant dense<0.000000e+00> : vector<8x32xf32>
    %41 = tpu.matmul %39, %40, %cst_14 {dimension_numbers = #tpu.dot_dimension_numbers<[1], [0], [0], [1], [0, 0, 1, 1], [], []>} : vector<8x32xbf16>, vector<32x32xbf16>, vector<8x32xf32> -> vector<8x32xf32>
    %42 = vector.extract_strided_slice %38 {offsets = [0, 0], sizes = [1, 32], strides = [1, 1]} : vector<5x32xf32> to vector<1x32xf32>
    %43 = vector.broadcast %42 : vector<1x32xf32> to vector<8x32xf32>
    %44 = arith.addf %41, %43 : vector<8x32xf32>
    %45 = vector.extract_strided_slice %38 {offsets = [1, 0], sizes = [1, 32], strides = [1, 1]} : vector<5x32xf32> to vector<1x32xf32>
    %46 = vector.broadcast %0 : vector<8x1xf32> to vector<8x32xf32>
    %47 = vector.broadcast %45 : vector<1x32xf32> to vector<8x32xf32>
    %48 = arith.mulf %46, %47 : vector<8x32xf32>
    %49 = arith.addf %44, %48 : vector<8x32xf32>
    %50 = vector.extract_strided_slice %38 {offsets = [2, 0], sizes = [1, 32], strides = [1, 1]} : vector<5x32xf32> to vector<1x32xf32>
    %51 = vector.broadcast %1 : vector<8x1xf32> to vector<8x32xf32>
    %52 = vector.broadcast %50 : vector<1x32xf32> to vector<8x32xf32>
    %53 = arith.mulf %51, %52 : vector<8x32xf32>
    %54 = arith.addf %49, %53 : vector<8x32xf32>
    %55 = vector.extract_strided_slice %38 {offsets = [3, 0], sizes = [1, 32], strides = [1, 1]} : vector<5x32xf32> to vector<1x32xf32>
    %56 = vector.broadcast %4 : vector<8x1xf32> to vector<8x32xf32>
    %57 = vector.broadcast %55 : vector<1x32xf32> to vector<8x32xf32>
    %58 = arith.mulf %56, %57 : vector<8x32xf32>
    %59 = arith.addf %54, %58 : vector<8x32xf32>
    %60 = vector.extract_strided_slice %38 {offsets = [4, 0], sizes = [1, 32], strides = [1, 1]} : vector<5x32xf32> to vector<1x32xf32>
    %61 = vector.broadcast %7 : vector<8x1xf32> to vector<8x32xf32>
    %62 = vector.broadcast %60 : vector<1x32xf32> to vector<8x32xf32>
    %63 = arith.mulf %61, %62 : vector<8x32xf32>
    %64 = arith.addf %59, %63 : vector<8x32xf32>
    %cst_15 = arith.constant 0.000000e+00 : f32
    %65 = vector.broadcast %cst_15 : f32 to vector<8x32xf32>
    %66 = arith.maximumf %64, %65 : vector<8x32xf32>
    %c0_16 = arith.constant 0 : index
    %c0_17 = arith.constant 0 : index
    %67 = vector.load %arg8[%c0_16, %c0_17] : memref<5x1xf32, #tpu.memory_space<vmem>>, vector<5x1xf32>
    %68 = arith.truncf %66 : vector<8x32xf32> to vector<8x32xbf16>
    %c0_18 = arith.constant 0 : index
    %c0_19 = arith.constant 0 : index
    %69 = vector.load %arg7[%c0_18, %c0_19] : memref<32x1xbf16, #tpu.memory_space<vmem>>, vector<32x1xbf16>
    %cst_20 = arith.constant dense<0.000000e+00> : vector<8x1xf32>
    %70 = tpu.matmul %68, %69, %cst_20 {dimension_numbers = #tpu.dot_dimension_numbers<[1], [0], [0], [1], [0, 0, 1, 1], [], []>} : vector<8x32xbf16>, vector<32x1xbf16>, vector<8x1xf32> -> vector<8x1xf32>
    %71 = vector.extract_strided_slice %67 {offsets = [0, 0], sizes = [1, 1], strides = [1, 1]} : vector<5x1xf32> to vector<1x1xf32>
    %72 = vector.broadcast %71 : vector<1x1xf32> to vector<8x1xf32>
    %73 = arith.addf %70, %72 : vector<8x1xf32>
    %74 = vector.extract_strided_slice %67 {offsets = [1, 0], sizes = [1, 1], strides = [1, 1]} : vector<5x1xf32> to vector<1x1xf32>
    %75 = vector.broadcast %74 : vector<1x1xf32> to vector<8x1xf32>
    %76 = arith.mulf %0, %75 : vector<8x1xf32>
    %77 = arith.addf %73, %76 : vector<8x1xf32>
    %78 = vector.extract_strided_slice %67 {offsets = [2, 0], sizes = [1, 1], strides = [1, 1]} : vector<5x1xf32> to vector<1x1xf32>
    %79 = vector.broadcast %78 : vector<1x1xf32> to vector<8x1xf32>
    %80 = arith.mulf %1, %79 : vector<8x1xf32>
    %81 = arith.addf %77, %80 : vector<8x1xf32>
    %82 = vector.extract_strided_slice %67 {offsets = [3, 0], sizes = [1, 1], strides = [1, 1]} : vector<5x1xf32> to vector<1x1xf32>
    %83 = vector.broadcast %82 : vector<1x1xf32> to vector<8x1xf32>
    %84 = arith.mulf %4, %83 : vector<8x1xf32>
    %85 = arith.addf %81, %84 : vector<8x1xf32>
    %86 = vector.extract_strided_slice %67 {offsets = [4, 0], sizes = [1, 1], strides = [1, 1]} : vector<5x1xf32> to vector<1x1xf32>
    %87 = vector.broadcast %86 : vector<1x1xf32> to vector<8x1xf32>
    %88 = arith.mulf %7, %87 : vector<8x1xf32>
    %89 = arith.addf %85, %88 : vector<8x1xf32>
    %c0_21 = arith.constant 0 : index
    %c0_22 = arith.constant 0 : index
    %90 = vector.load %arg9[%c0_21, %c0_22] : memref<8x1xf32, #tpu.memory_space<vmem>>, vector<8x1xf32>
    tpu.vector_store %arg9[%c0_21, %c0_22], %89 {strides = array<i32>} : memref<8x1xf32, #tpu.memory_space<vmem>>, vector<8x1xf32>,
    return
  }
  func.func @transform_0(%arg0: i32) -> (i32, i32) {
    %c0_i32 = arith.constant 0 : i32
    %c0_i32_0 = arith.constant 0 : i32
    return %arg0, %c0_i32 : i32, i32
  }
  func.func @transform_1(%arg0: i32) -> (i32, i32) {
    %c0_i32 = arith.constant 0 : i32
    %c0_i32_0 = arith.constant 0 : i32
    return %arg0, %c0_i32 : i32, i32
  }
  func.func @transform_2(%arg0: i32) -> (i32, i32) {
    %c0_i32 = arith.constant 0 : i32
    %c0_i32_0 = arith.constant 0 : i32
    %c0_i32_1 = arith.constant 0 : i32
    return %c0_i32, %c0_i32_0 : i32, i32
  }
  func.func @transform_3(%arg0: i32) -> (i32, i32) {
    %c0_i32 = arith.constant 0 : i32
    %c0_i32_0 = arith.constant 0 : i32
    %c0_i32_1 = arith.constant 0 : i32
    return %c0_i32, %c0_i32_0 : i32, i32
  }
  func.func @transform_4(%arg0: i32) -> (i32, i32) {
    %c0_i32 = arith.constant 0 : i32
    %c0_i32_0 = arith.constant 0 : i32
    %c0_i32_1 = arith.constant 0 : i32
    return %c0_i32, %c0_i32_0 : i32, i32
  }
  func.func @transform_5(%arg0: i32) -> (i32, i32) {
    %c0_i32 = arith.constant 0 : i32
    %c0_i32_0 = arith.constant 0 : i32
    %c0_i32_1 = arith.constant 0 : i32
    return %c0_i32, %c0_i32_0 : i32, i32
  }
  func.func @transform_6(%arg0: i32) -> (i32, i32) {
    %c0_i32 = arith.constant 0 : i32
    %c0_i32_0 = arith.constant 0 : i32
    %c0_i32_1 = arith.constant 0 : i32
    return %c0_i32, %c0_i32_0 : i32, i32
  }
  func.func @transform_7(%arg0: i32) -> (i32, i32) {
    %c0_i32 = arith.constant 0 : i32
    %c0_i32_0 = arith.constant 0 : i32
    %c0_i32_1 = arith.constant 0 : i32
    return %c0_i32, %c0_i32_0 : i32, i32
  }
  func.func @transform_8(%arg0: i32) -> (i32, i32) {
    %c0_i32 = arith.constant 0 : i32
    %c0_i32_0 = arith.constant 0 : i32
    return %arg0, %c0_i32 : i32, i32
  }
}

</mosaic_0001>

<bundles_post_ra>
// kernel: _prednet_call.1
= control target key start
LH: loop header
LB: loop body
LE: loop exit
PB: predicated region body
PF: predicated region fallthrough
CT: control target
= control target key end

     0   :  { %s800_s27 = smov 0   ;;  %s887_s0 = inlined_call_operand.vmem [shape: f32[16,16], index: 0, kind: input, shape index: {}]   ;;  %s888_s1 = inlined_call_operand.vmem [shape: f32[16,1], index: 1, kind: input, shape index: {}]   ;;  %s889_s2 = inlined_call_operand.vmem [shape: bf16[16,32], index: 2, kind: input, shape index: {}]   ;;  %s890_s3 = inlined_call_operand.vmem [shape: f32[5,32], index: 3, kind: input, shape index: {}]   ;;  %s891_s4 = inlined_call_operand.vmem [shape: bf16[32,32], index: 4, kind: input, shape index: {}]   ;;  %s892_s5 = inlined_call_operand.vmem [shape: f32[5,32], index: 5, kind: input, shape index: {}]   ;;  %s893_s6 = inlined_call_operand.vmem [shape: bf16[32,1], index: 6, kind: input, shape index: {}]   ;;  %s894_s7 = inlined_call_operand.vmem [shape: f32[5,1], index: 7, kind: input, shape index: {}]   ;;  %s895_s8 = inlined_call_operand.vmem [shape: f32[16,1], index: 8, kind: output, shape index: {}]  }
   0x1 LB: > { %s676_s28 = sadd.s32 4294967295, %s750_s27   ;;  %p680_p0 = scmp.ge.s32.totalorder %s750_s27, 1  ;;  %s750_s27 = sphi %s800_s27, %s18_s27  }
   0x2   : > { %p270_p1 = scmp.lt.s32.totalorder %s750_s27, 3 }
   0x4   : > { %p271_p2 = pnand %p680_p0, %p270_p1 }
   0x5   : > { %v739_v0 = vld [vmem:[%s889_s2] sm:$0xff] (!%p271_p2)   ;;  %v330_v1 = vlaneseq (!%p271_p2)  ;;  %v752_v2 = vmov (!%p271_p2), 0.0   ;;  %p306_p3 = scmp.lt.s32.totalorder (!%p271_p2), %s676_s28, 1  ;;  %vm753_vm0 = vmmov (!%p271_p2), 0   ;;  %v754_v4 = vmov (!%p271_p2), 0   ;;  %v741_v21 = vld [vmem:[%s891_s4 + $0x8] sm:$0xff] (!%p271_p2)  }
   0x6   : > { %274 = sbr.rel (%p271_p2) target bundleno = 694 (0x2b6), region = 52  ;;  %704 = vmatprep.subr.bf16.mxu0 (!%p271_p2), %v752_v2  ;;  %710 = vmatprep.subr.bf16.mxu1 (!%p271_p2), %v752_v2  ;;  %v818_v5 = vld [vmem:[%s894_s7] sm:$0x1f] (!%p271_p2)  ;;  %vm340_vm1 = vcmask (!%p271_p2), 130048   ;;  %vm451_vm2 = vcmask (!%p271_p2), 261120   ;;  %v743_v56 = vld [vmem:[%s893_s6 + $0x8] sm:$0xff] (!%p271_p2)  }
   0x7   : > { %705 = vmatpush3.bf16.msra.mxu0 (!%p271_p2), %v739_v0  ;;  %706 = vmatprep.mubr.msk.bf16.mxu0 (!%p271_p2), %vm753_vm0, %v752_v2  ;;  %v331_v3 = vshrl.u32 (!%p271_p2), %v330_v1, 7  ;;  %v740_v20 = vld [vmem:[%s891_s4] sm:$0xff] (!%p271_p2)   ;;  %vm609_vm3 = vcmask (!%p271_p2), 7168  }
   0x8   : > { %737 = vset.pattern.permute.xlu0 (!%p271_p2), %v754_v4  ;;  %738 = vset.pattern.permute.xlu1 (!%p271_p2), %v754_v4  ;;  %v429_v22 = vld [vmem:[%s892_s5] sm:$0x1f] (!%p271_p2) }
   0x9   : > { %714 = vmatprep.mubr.msk.bf16.mxu1 (!%p271_p2), %vm753_vm0, %v752_v2  ;;  %718 = vmatprep.subr.bf16.mxu0 (!%p271_p2), %v752_v2  ;;  %v402_v6 = vsub.s32 (!%p271_p2), 2, %v331_v3  ;;  %v413_v8 = vsub.s32 (!%p271_p2), 3, %v331_v3  ;;  %v391_v30 = vsub.s32 (!%p271_p2), 1, %v331_v3  ;;  %v332_v31 = vsub.s32 (!%p271_p2), 0, %v331_v3  ;;  %v326_v32 = vld [vmem:[%s890_s3] sm:$0x1f] (!%p271_p2) }
   0xa   : > { %711 = vmatpush3.bf16.msra.mxu1 (!%p271_p2), %v740_v20  ;;  %v424_v35 = vsub.s32 (!%p271_p2), 4, %v331_v3  ;;  %v742_v55 = vld [vmem:[%s893_s6] sm:$0xff] (!%p271_p2)  }
   0xb   : > { %v594_v9 = vrot.slane (!%p271_p2), %v818_v5, %v402_v6  ;;  %v600_v13 = vrot.slane (!%p271_p2), %v818_v5, %v413_v8  ;;  %712 = vmatprep.subr.bf16.mxu1 (!%p271_p2), %v752_v2  ;;  %v510_v24 = vrot.slane (!%p271_p2), %v429_v22, %v413_v8  ;;  %v504_v25 = vrot.slane (!%p271_p2), %v429_v22, %v402_v6 }
   0xc   : > { %v392_v33 = vrot.slane (!%p271_p2), %v326_v32, %v391_v30  ;;  %v333_v34 = vrot.slane (!%p271_p2), %v326_v32, %v332_v31  ;;  %v403_v36 = vrot.slane (!%p271_p2), %v326_v32, %v402_v6  ;;  %v414_v39 = vrot.slane (!%p271_p2), %v326_v32, %v413_v8 }
   0xd   : > { %s897_s28 = smov (!%p306_p3, %s676_s28), 1  ;;  %v425_v45 = vrot.slane %v326_v32, %v424_v35  ;;  %v498_v57 = vrot.slane %v429_v22, %v391_v30  ;;  %v438_v58 = vrot.slane %v429_v22, %v332_v31  ;;  %v516_v0 = vrot.slane %v429_v22, %v424_v35 }
   0xe   : > { %s823_s11 = sshll.u32 %s897_s28, 3  ;;  %713 = vmatpush3.bf16.msra.mxu1 %v741_v21 }
   0xf   : > { %s309_s14 = scalar_lea.vmem %s887_s0, %s823_s11  ;;  %s313_s17 = scalar_lea.vmem %s888_s1, %s823_s11 }
  0x10   : > { %v325_v7 = vld [vmem:[%s309_s14] sm:$0xff]  ;;  %s317_s12 = scalar_lea.vmem %s895_s8, %s823_s11 }
  0x11   : > { %v327_v10 = vpack.c.bf16 %v325_v7, %v325_v7  ;;  %v834_v11 = vld [vmem:[%s313_s17] sm:$0xff] }
  0x12   : > { %386 = vperm.xlu0 %737, %v834_v11   ;;  %v684_v12 = vadd.f32 -0.33333334, %v834_v11  ;;  %v320_v14 = vmul.f32 %v834_v11, %v834_v11  ;;  %v685_v15 = vadd.f32 -0.6666667, %v834_v11 }
  0x13   : > { %707 = vmatmul.mubr.msk.bf16.vlgmr.msra.gmra.mrb[0].mxu0 %vm340_vm1, %v327_v10  ;;  %v588_v10 = vrot.slane %v818_v5, %v391_v30 }
  0x14   : > { %v322_v16 = vmul.f32 %v684_v12, %v684_v12  ;;  %v842_v17 = vmul.f32 %v594_v9, %v320_v14  ;;  %722 = vmatprep.mubr.msk.bf16.mxu0 %vm753_vm0, %v752_v2  ;;  %v848_v19 = vmul.f32 %v685_v15, %v685_v15  ;;  %719 = vmatpush3.bf16.msra.mxu0 %v742_v55 }
  0x15   : > { %720 = vmatprep.subr.bf16.mxu0 %v752_v2  ;;  %v529_v12 = vrot.slane %v818_v5, %v332_v31  ;;  %v606_v15 = vrot.slane %v818_v5, %v424_v35 }
  0x16   : > { %408 = vperm.xlu1 %738, %v322_v16   ;;  %v846_v18 = vmul.f32 %v600_v13, %v322_v16  ;;  %397 = vperm.xlu0 %737, %v320_v14   ;;  %v589_v13 = vmul.f32 %v588_v10, %v834_v11 }
  0x18   : > { %721 = vmatpush3.bf16.msra.mxu0 %v743_v56 }
  0x1a   : > { %419 = vperm.xlu1 %738, %v848_v19  }
  0x91   : > { %v387_v23 = vpop.permute.xlu0 %386 }
  0x92   : > { %v393_v38 = vmul.f32 %v392_v33, %v387_v23  ;;  %v499_v60 = vmul.f32 %v498_v57, %v387_v23 }
  0x95   : > { %v409_v26 = vpop.permute.xlu1 %408  ;;  %v398_v27 = vpop.permute.xlu0 %397 }
  0x96   : > { %v511_v28 = vmul.f32 %v510_v24, %v409_v26  ;;  %v505_v29 = vmul.f32 %v504_v25, %v398_v27  ;;  %v404_v43 = vmul.f32 %v403_v36, %v398_v27  ;;  %v415_v48 = vmul.f32 %v414_v39, %v409_v26 }
  0x97   : > { %v607_v24 = vmul.f32 %v606_v15, %v848_v19 }
  0x99   : > { %v420_v47 = vpop.permute.xlu1 %419 }
  0x9a   : > { %v426_v51 = vmul.f32 %v425_v45, %v420_v47  ;;  %v517_v6 = vmul.f32 %v516_v0, %v420_v47 }
  0xe6   : > { %v378_v37 = vpop.f32.mrb[0].mxu0 }
  0xe7   : > { %v379_v40 = vadd.f32 %v378_v37, %v333_v34  ;;  %v708_v41 = vpop.f32.mrb[1].mxu0 }
  0xe8   : > { %v381_v42 = vpop.f32.mrb[2].mxu0 }
  0xe9   : > { %v394_v44 = vadd.f32 %v393_v38, %v379_v40  ;;  %v709_v46 = vpop.f32.mrb[3].mxu0 }
  0xeb   : > { %v405_v49 = vadd.f32 %v404_v43, %v394_v44 }
  0xed   : > { %v416_v50 = vadd.f32 %v415_v48, %v405_v49 }
  0xef   : > { %v427_v52 = vadd.f32 %v426_v51, %v416_v50 }
  0xf1   : > { %v428_v53 = vmax.f32 %v427_v52, 0.0 }
  0xf3   : > { %v430_v54 = vpack.c.bf16 %v428_v53, %v428_v53 }
  0xf5   : > { %715 = vmatmul.mubr.msk.bf16.vlgmr.msra.gmra.mrb[0].mxu1 %vm451_vm2, %v430_v54 }
 0x1c8   : > { %v489_v59 = vpop.f32.mrb[0].mxu1 }
 0x1c9   : > { %v490_v61 = vadd.f32 %v489_v59, %v438_v58  ;;  %v716_v62 = vpop.f32.mrb[1].mxu1 }
 0x1ca   : > { %v492_v63 = vpop.f32.mrb[2].mxu1 }
 0x1cb   : > { %v500_v1 = vadd.f32 %v499_v60, %v490_v61  ;;  %v717_v3 = vpop.f32.mrb[3].mxu1 }
 0x1cd   : > { %v506_v4 = vadd.f32 %v505_v29, %v500_v1 }
 0x1cf   : > { %v512_v7 = vadd.f32 %v511_v28, %v506_v4 }
 0x1d1   : > { %v518_v8 = vadd.f32 %v517_v6, %v512_v7 }
 0x1d3   : > { %v519_v2 = vmax.f32 %v518_v8, 0.0 }
 0x1d5   : > { %v521_v9 = vpack.c.bf16 %v519_v2, %v519_v2 }
 0x1d7   : > { %723 = vmatmul.mubr.msk.bf16.vlgmr.msra.gmra.mrb[4].mxu0 %vm451_vm2, %v521_v9 }
 0x2aa   : > { %v579_v14 = vpop.f32.mrb[4].mxu0 }
 0x2ab   : > { %v580_v16 = vadd.f32 %v579_v14, %v529_v12  ;;  %v724_v20 = vpop.f32.mrb[5].mxu0 }
 0x2ac   : > { %v582_v21 = vpop.f32.mrb[6].mxu0 }
 0x2ad   : > { %v590_v22 = vadd.f32 %v589_v13, %v580_v16  ;;  %v725_v23 = vpop.f32.mrb[7].mxu0 }
 0x2af   : > { %v596_v25 = vadd.f32 %v842_v17, %v590_v22 }
 0x2b1   : > { %v602_v26 = vadd.f32 %v846_v18, %v596_v25 }
 0x2b3   : > { %v608_v11 = vadd.f32 %v607_v24, %v602_v26 }
 0x2b5   : > { %610 = vst.msk [vmem:[%s317_s12] sm:$0xff] %vm609_vm3, %v608_v11 }
 0x2b6 PF: > { %s18_s27 = sadd.s32 1, %s750_s27  }
 0x2b7   : > { %p15_p4 = scmp.ge.s32.totalorder %s18_s27, 4  }
 0x2b9   :  { %17 = sbr.rel (!%p15_p4) target bundleno = 1 (0x1), region = 85 }

</bundles_post_ra>
